<compile_context>
chip_gen: v7x
topology: tpu7x:2x2x1
jax: 0.10.0
libtpu: 0.0.40
codegen_flags: <defaults>
</compile_context>

<pallas_src>
import functools

import jax
import jax.numpy as jnp
from jax.experimental import pallas as pl
from jax.experimental.pallas import tpu as pltpu

INPUT_DIM = 32
OUTPUT_DIM = 8
HIDDEN = [16, 64, 128, 64, 16]
N_HIDDEN = len(HIDDEN)          # 5 hidden blocks
N_LAYERS = N_HIDDEN + 1         # + output Linear
BN_EPS = 1e-5

PAD = 128                       # lane-dense feature width
VEC_ROWS = 16                   # padded row count of the vector slab
OUT_BIAS_ROW = 2 * N_HIDDEN     # row 10 holds the final Linear bias


def _generator_kernel(x_ref, w_ref, v_ref, o_ref):
    """Whole generator MLP, everything resident in VMEM (lane width 128)."""
    h = x_ref[...]  # (B, 128) f32

    for l in range(N_HIDDEN):
        # Linear (no bias: cancelled by the following BatchNorm mean-subtract).
        h = jnp.dot(h, w_ref[l], preferred_element_type=jnp.float32)

        # BatchNorm1d, training semantics (per-lane batch mean, biased var),
        # fused into a single scale/shift FMA. mean and E[h^2] reductions are
        # independent so they can issue back-to-back on the XLU.
        mu = jnp.mean(h, axis=0, keepdims=True)          # (1, 128)
        ex2 = jnp.mean(h * h, axis=0, keepdims=True)     # (1, 128)
        var = jnp.maximum(ex2 - mu * mu, 0.0)

        gamma = v_ref[2 * l:2 * l + 1, :]                # (1, 128), 0 in pad lanes
        beta = v_ref[2 * l + 1:2 * l + 2, :]
        scale = gamma * jax.lax.rsqrt(var + BN_EPS)
        shift = beta - mu * scale

        # BN + ReLU.  Dropout(0.1) = identity (eval semantics).
        h = jnp.maximum(h * scale + shift, 0.0)

    # Final Linear (bias kept) -> Sigmoid.
    b_out = v_ref[OUT_BIAS_ROW:OUT_BIAS_ROW + 1, :]
    h = jnp.dot(h, w_ref[N_HIDDEN], preferred_element_type=jnp.float32) + b_out
    o_ref[...] = jax.nn.sigmoid(h).astype(o_ref.dtype)


def init_params(key, input_dim, output_dim):
    """PyTorch-default-style init (U(-1/sqrt(fan_in), 1/sqrt(fan_in)))."""
    dims = [input_dim] + HIDDEN + [output_dim]
    layers = []
    for i in range(len(dims) - 1):
        fan_in, fan_out = dims[i], dims[i + 1]
        key, kw, kb = jax.random.split(key, 3)
        bound = 1.0 / float(fan_in) ** 0.5
        layer = {
            # Stored as (in, out) so the kernel does x @ W (== torch x @ W.T).
            "w": jax.random.uniform(kw, (fan_in, fan_out), jnp.float32, -bound, bound),
            "b": jax.random.uniform(kb, (fan_out,), jnp.float32, -bound, bound),
        }
        if i < len(dims) - 2:  # BatchNorm affine params for hidden layers
            layer["gamma"] = jnp.ones((fan_out,), jnp.float32)
            layer["beta"] = jnp.zeros((fan_out,), jnp.float32)
        layers.append(layer)
    return layers


def pack_params(layers):
    """Pack all parameters into two zero-padded, lane-dense slabs."""
    w_stack = jnp.zeros((N_LAYERS, PAD, PAD), jnp.float32)
    v_stack = jnp.zeros((VEC_ROWS, PAD), jnp.float32)
    for l, layer in enumerate(layers):
        fi, fo = layer["w"].shape
        w_stack = w_stack.at[l, :fi, :fo].set(layer["w"])
        if "gamma" in layer:
            # Hidden Linear bias intentionally dropped (cancelled by BN).
            v_stack = v_stack.at[2 * l, :fo].set(layer["gamma"])
            v_stack = v_stack.at[2 * l + 1, :fo].set(layer["beta"])
        else:
            v_stack = v_stack.at[OUT_BIAS_ROW, :fo].set(layer["b"])
    return w_stack, v_stack


@functools.partial(jax.jit, static_argnames=("output_dim",))
def generator_forward(x, w_stack, v_stack, *, output_dim):
    batch, in_dim = x.shape
    # Pad the input to lane width 128 (padded columns multiply zero weight rows).
    x_pad = jnp.pad(x.astype(jnp.float32), ((0, 0), (0, PAD - in_dim)))

    vmem_spec = pl.BlockSpec(memory_space=pltpu.MemorySpace.VMEM)
    # Explicit VMEM budget: params + a few live (batch, 128) f32 activations
    # + margin.  Capped well under v7x's 64 MiB physical VMEM.
    vmem_bytes = int(w_stack.size * 4 + v_stack.size * 4
                     + 8 * batch * PAD * 4 + (8 << 20))
    vmem_bytes = min(vmem_bytes, 60 * 1024 * 1024)

    out_pad = pl.pallas_call(
        _generator_kernel,
        out_shape=jax.ShapeDtypeStruct((batch, PAD), jnp.float32),
        in_specs=[vmem_spec, vmem_spec, vmem_spec],
        out_specs=vmem_spec,
        compiler_params=pltpu.CompilerParams(vmem_limit_bytes=vmem_bytes),
    )(x_pad, w_stack, v_stack)

    # Slice the lane-dense output back to the real feature width.
    return out_pad[:, :output_dim]


def reference_forward(x, layers):
    """Pure-JAX reference (full PyTorch semantics incl. hidden biases)."""
    h = x.astype(jnp.float32)
    for layer in layers[:-1]:
        h = h @ layer["w"] + layer["b"]
        mu = jnp.mean(h, axis=0, keepdims=True)
        var = jnp.mean((h - mu) ** 2, axis=0, keepdims=True)
        h = (h - mu) / jnp.sqrt(var + BN_EPS) * layer["gamma"] + layer["beta"]
        h = jnp.maximum(h, 0.0)
    last = layers[-1]
    return jax.nn.sigmoid(h @ last["w"] + last["b"])


if __name__ == "__main__":
    key = jax.random.PRNGKey(0)
    kx, kp = jax.random.split(key)

    batch = 64  # multiple of 8 sublanes; BN uses full-batch statistics
    x = jax.random.normal(kx, (batch, INPUT_DIM), jnp.float32)

    layers = init_params(kp, INPUT_DIM, OUTPUT_DIM)
    w_stack, v_stack = pack_params(layers)

    out = generator_forward(x, w_stack, v_stack, output_dim=OUTPUT_DIM)
    out = jax.block_until_ready(out)

    ref = reference_forward(x, layers)
    assert out.shape == (batch, OUTPUT_DIM), out.shape
    max_err = float(jnp.max(jnp.abs(out - ref)))
    assert jnp.allclose(out, ref, atol=1e-4, rtol=1e-4), max_err

    print("KERNEL_OK")
</pallas_src>

<mosaic_0001>
module attributes {stable_mosaic.version = 11 : i64} {
  func.func @_generator_kernel(%arg0: memref<64x128xf32, #tpu.memory_space<vmem>>, %arg1: memref<6x128x128xf32, #tpu.memory_space<vmem>>, %arg2: memref<16x128xf32, #tpu.memory_space<vmem>>, %arg3: memref<64x128xf32, #tpu.memory_space<vmem>>) attributes {dimension_semantics = [], scalar_prefetch = 0 : i64, scratch_operands = 0 : i64, tpu.core_type = #tpu.core_type<tc>} {
    %c0 = arith.constant 0 : index
    %c0_0 = arith.constant 0 : index
    %0 = vector.load %arg0[%c0, %c0_0] : memref<64x128xf32, #tpu.memory_space<vmem>>, vector<64x128xf32>
    %c0_1 = arith.constant 0 : index
    %c0_2 = arith.constant 0 : index
    %c0_3 = arith.constant 0 : index
    %1 = vector.load %arg1[%c0_1, %c0_2, %c0_3] : memref<6x128x128xf32, #tpu.memory_space<vmem>>, vector<1x128x128xf32>
    %2 = vector.shape_cast %1 : vector<1x128x128xf32> to vector<128x128xf32>
    %cst = arith.constant dense<0.000000e+00> : vector<64x128xf32>
    %3 = tpu.matmul %0, %2, %cst {dimension_numbers = #tpu.dot_dimension_numbers<[1], [0], [0], [1], [0, 0, 1, 1], [], []>} : vector<64x128xf32>, vector<128x128xf32>, vector<64x128xf32> -> vector<64x128xf32>
    %cst_4 = arith.constant dense<0.000000e+00> : vector<128xf32>
    %4 = vector.multi_reduction <add>, %3, %cst_4 [0] : vector<64x128xf32> to vector<128xf32>
    %5 = vector.shape_cast %4 : vector<128xf32> to vector<1x128xf32>
    %cst_5 = arith.constant 6.400000e+01 : f32
    %6 = vector.broadcast %cst_5 : f32 to vector<1x128xf32>
    %7 = arith.divf %5, %6 : vector<1x128xf32>
    %8 = arith.mulf %3, %3 : vector<64x128xf32>
    %cst_6 = arith.constant dense<0.000000e+00> : vector<128xf32>
    %9 = vector.multi_reduction <add>, %8, %cst_6 [0] : vector<64x128xf32> to vector<128xf32>
    %10 = vector.shape_cast %9 : vector<128xf32> to vector<1x128xf32>
    %cst_7 = arith.constant 6.400000e+01 : f32
    %11 = vector.broadcast %cst_7 : f32 to vector<1x128xf32>
    %12 = arith.divf %10, %11 : vector<1x128xf32>
    %13 = arith.mulf %7, %7 : vector<1x128xf32>
    %14 = arith.subf %12, %13 : vector<1x128xf32>
    %cst_8 = arith.constant 0.000000e+00 : f32
    %15 = vector.broadcast %cst_8 : f32 to vector<1x128xf32>
    %16 = arith.maximumf %14, %15 : vector<1x128xf32>
    %c0_9 = arith.constant 0 : index
    %c0_10 = arith.constant 0 : index
    %17 = vector.load %arg2[%c0_9, %c0_10] : memref<16x128xf32, #tpu.memory_space<vmem>>, vector<1x128xf32>
    %c1 = arith.constant 1 : index
    %c0_11 = arith.constant 0 : index
    %18 = vector.load %arg2[%c1, %c0_11] : memref<16x128xf32, #tpu.memory_space<vmem>>, vector<1x128xf32>
    %cst_12 = arith.constant 9.99999974E-6 : f32
    %19 = vector.broadcast %cst_12 : f32 to vector<1x128xf32>
    %20 = arith.addf %16, %19 : vector<1x128xf32>
    %21 = math.rsqrt %20 : vector<1x128xf32>
    %22 = arith.mulf %17, %21 : vector<1x128xf32>
    %23 = arith.mulf %7, %22 : vector<1x128xf32>
    %24 = arith.subf %18, %23 : vector<1x128xf32>
    %25 = vector.broadcast %22 : vector<1x128xf32> to vector<64x128xf32>
    %26 = arith.mulf %3, %25 : vector<64x128xf32>
    %27 = vector.broadcast %24 : vector<1x128xf32> to vector<64x128xf32>
    %28 = arith.addf %26, %27 : vector<64x128xf32>
    %cst_13 = arith.constant 0.000000e+00 : f32
    %29 = vector.broadcast %cst_13 : f32 to vector<64x128xf32>
    %30 = arith.maximumf %28, %29 : vector<64x128xf32>
    %c1_14 = arith.constant 1 : index
    %c0_15 = arith.constant 0 : index
    %c0_16 = arith.constant 0 : index
    %31 = vector.load %arg1[%c1_14, %c0_15, %c0_16] : memref<6x128x128xf32, #tpu.memory_space<vmem>>, vector<1x128x128xf32>
    %32 = vector.shape_cast %31 : vector<1x128x128xf32> to vector<128x128xf32>
    %cst_17 = arith.constant dense<0.000000e+00> : vector<64x128xf32>
    %33 = tpu.matmul %30, %32, %cst_17 {dimension_numbers = #tpu.dot_dimension_numbers<[1], [0], [0], [1], [0, 0, 1, 1], [], []>} : vector<64x128xf32>, vector<128x128xf32>, vector<64x128xf32> -> vector<64x128xf32>
    %cst_18 = arith.constant dense<0.000000e+00> : vector<128xf32>
    %34 = vector.multi_reduction <add>, %33, %cst_18 [0] : vector<64x128xf32> to vector<128xf32>
    %35 = vector.shape_cast %34 : vector<128xf32> to vector<1x128xf32>
    %cst_19 = arith.constant 6.400000e+01 : f32
    %36 = vector.broadcast %cst_19 : f32 to vector<1x128xf32>
    %37 = arith.divf %35, %36 : vector<1x128xf32>
    %38 = arith.mulf %33, %33 : vector<64x128xf32>
    %cst_20 = arith.constant dense<0.000000e+00> : vector<128xf32>
    %39 = vector.multi_reduction <add>, %38, %cst_20 [0] : vector<64x128xf32> to vector<128xf32>
    %40 = vector.shape_cast %39 : vector<128xf32> to vector<1x128xf32>
    %cst_21 = arith.constant 6.400000e+01 : f32
    %41 = vector.broadcast %cst_21 : f32 to vector<1x128xf32>
    %42 = arith.divf %40, %41 : vector<1x128xf32>
    %43 = arith.mulf %37, %37 : vector<1x128xf32>
    %44 = arith.subf %42, %43 : vector<1x128xf32>
    %cst_22 = arith.constant 0.000000e+00 : f32
    %45 = vector.broadcast %cst_22 : f32 to vector<1x128xf32>
    %46 = arith.maximumf %44, %45 : vector<1x128xf32>
    %c2 = arith.constant 2 : index
    %c0_23 = arith.constant 0 : index
    %47 = vector.load %arg2[%c2, %c0_23] : memref<16x128xf32, #tpu.memory_space<vmem>>, vector<1x128xf32>
    %c3 = arith.constant 3 : index
    %c0_24 = arith.constant 0 : index
    %48 = vector.load %arg2[%c3, %c0_24] : memref<16x128xf32, #tpu.memory_space<vmem>>, vector<1x128xf32>
    %cst_25 = arith.constant 9.99999974E-6 : f32
    %49 = vector.broadcast %cst_25 : f32 to vector<1x128xf32>
    %50 = arith.addf %46, %49 : vector<1x128xf32>
    %51 = math.rsqrt %50 : vector<1x128xf32>
    %52 = arith.mulf %47, %51 : vector<1x128xf32>
    %53 = arith.mulf %37, %52 : vector<1x128xf32>
    %54 = arith.subf %48, %53 : vector<1x128xf32>
    %55 = vector.broadcast %52 : vector<1x128xf32> to vector<64x128xf32>
    %56 = arith.mulf %33, %55 : vector<64x128xf32>
    %57 = vector.broadcast %54 : vector<1x128xf32> to vector<64x128xf32>
    %58 = arith.addf %56, %57 : vector<64x128xf32>
    %cst_26 = arith.constant 0.000000e+00 : f32
    %59 = vector.broadcast %cst_26 : f32 to vector<64x128xf32>
    %60 = arith.maximumf %58, %59 : vector<64x128xf32>
    %c2_27 = arith.constant 2 : index
    %c0_28 = arith.constant 0 : index
    %c0_29 = arith.constant 0 : index
    %61 = vector.load %arg1[%c2_27, %c0_28, %c0_29] : memref<6x128x128xf32, #tpu.memory_space<vmem>>, vector<1x128x128xf32>
    %62 = vector.shape_cast %61 : vector<1x128x128xf32> to vector<128x128xf32>
    %cst_30 = arith.constant dense<0.000000e+00> : vector<64x128xf32>
    %63 = tpu.matmul %60, %62, %cst_30 {dimension_numbers = #tpu.dot_dimension_numbers<[1], [0], [0], [1], [0, 0, 1, 1], [], []>} : vector<64x128xf32>, vector<128x128xf32>, vector<64x128xf32> -> vector<64x128xf32>
    %cst_31 = arith.constant dense<0.000000e+00> : vector<128xf32>
    %64 = vector.multi_reduction <add>, %63, %cst_31 [0] : vector<64x128xf32> to vector<128xf32>
    %65 = vector.shape_cast %64 : vector<128xf32> to vector<1x128xf32>
    %cst_32 = arith.constant 6.400000e+01 : f32
    %66 = vector.broadcast %cst_32 : f32 to vector<1x128xf32>
    %67 = arith.divf %65, %66 : vector<1x128xf32>
    %68 = arith.mulf %63, %63 : vector<64x128xf32>
    %cst_33 = arith.constant dense<0.000000e+00> : vector<128xf32>
    %69 = vector.multi_reduction <add>, %68, %cst_33 [0] : vector<64x128xf32> to vector<128xf32>
    %70 = vector.shape_cast %69 : vector<128xf32> to vector<1x128xf32>
    %cst_34 = arith.constant 6.400000e+01 : f32
    %71 = vector.broadcast %cst_34 : f32 to vector<1x128xf32>
    %72 = arith.divf %70, %71 : vector<1x128xf32>
    %73 = arith.mulf %67, %67 : vector<1x128xf32>
    %74 = arith.subf %72, %73 : vector<1x128xf32>
    %cst_35 = arith.constant 0.000000e+00 : f32
    %75 = vector.broadcast %cst_35 : f32 to vector<1x128xf32>
    %76 = arith.maximumf %74, %75 : vector<1x128xf32>
    %c4 = arith.constant 4 : index
    %c0_36 = arith.constant 0 : index
    %77 = vector.load %arg2[%c4, %c0_36] : memref<16x128xf32, #tpu.memory_space<vmem>>, vector<1x128xf32>
    %c5 = arith.constant 5 : index
    %c0_37 = arith.constant 0 : index
    %78 = vector.load %arg2[%c5, %c0_37] : memref<16x128xf32, #tpu.memory_space<vmem>>, vector<1x128xf32>
    %cst_38 = arith.constant 9.99999974E-6 : f32
    %79 = vector.broadcast %cst_38 : f32 to vector<1x128xf32>
    %80 = arith.addf %76, %79 : vector<1x128xf32>
    %81 = math.rsqrt %80 : vector<1x128xf32>
    %82 = arith.mulf %77, %81 : vector<1x128xf32>
    %83 = arith.mulf %67, %82 : vector<1x128xf32>
    %84 = arith.subf %78, %83 : vector<1x128xf32>
    %85 = vector.broadcast %82 : vector<1x128xf32> to vector<64x128xf32>
    %86 = arith.mulf %63, %85 : vector<64x128xf32>
    %87 = vector.broadcast %84 : vector<1x128xf32> to vector<64x128xf32>
    %88 = arith.addf %86, %87 : vector<64x128xf32>
    %cst_39 = arith.constant 0.000000e+00 : f32
    %89 = vector.broadcast %cst_39 : f32 to vector<64x128xf32>
    %90 = arith.maximumf %88, %89 : vector<64x128xf32>
    %c3_40 = arith.constant 3 : index
    %c0_41 = arith.constant 0 : index
    %c0_42 = arith.constant 0 : index
    %91 = vector.load %arg1[%c3_40, %c0_41, %c0_42] : memref<6x128x128xf32, #tpu.memory_space<vmem>>, vector<1x128x128xf32>
    %92 = vector.shape_cast %91 : vector<1x128x128xf32> to vector<128x128xf32>
    %cst_43 = arith.constant dense<0.000000e+00> : vector<64x128xf32>
    %93 = tpu.matmul %90, %92, %cst_43 {dimension_numbers = #tpu.dot_dimension_numbers<[1], [0], [0], [1], [0, 0, 1, 1], [], []>} : vector<64x128xf32>, vector<128x128xf32>, vector<64x128xf32> -> vector<64x128xf32>
    %cst_44 = arith.constant dense<0.000000e+00> : vector<128xf32>
    %94 = vector.multi_reduction <add>, %93, %cst_44 [0] : vector<64x128xf32> to vector<128xf32>
    %95 = vector.shape_cast %94 : vector<128xf32> to vector<1x128xf32>
    %cst_45 = arith.constant 6.400000e+01 : f32
    %96 = vector.broadcast %cst_45 : f32 to vector<1x128xf32>
    %97 = arith.divf %95, %96 : vector<1x128xf32>
    %98 = arith.mulf %93, %93 : vector<64x128xf32>
    %cst_46 = arith.constant dense<0.000000e+00> : vector<128xf32>
    %99 = vector.multi_reduction <add>, %98, %cst_46 [0] : vector<64x128xf32> to vector<128xf32>
    %100 = vector.shape_cast %99 : vector<128xf32> to vector<1x128xf32>
    %cst_47 = arith.constant 6.400000e+01 : f32
    %101 = vector.broadcast %cst_47 : f32 to vector<1x128xf32>
    %102 = arith.divf %100, %101 : vector<1x128xf32>
    %103 = arith.mulf %97, %97 : vector<1x128xf32>
    %104 = arith.subf %102, %103 : vector<1x128xf32>
    %cst_48 = arith.constant 0.000000e+00 : f32
    %105 = vector.broadcast %cst_48 : f32 to vector<1x128xf32>
    %106 = arith.maximumf %104, %105 : vector<1x128xf32>
    %c6 = arith.constant 6 : index
    %c0_49 = arith.constant 0 : index
    %107 = vector.load %arg2[%c6, %c0_49] : memref<16x128xf32, #tpu.memory_space<vmem>>, vector<1x128xf32>
    %c7 = arith.constant 7 : index
    %c0_50 = arith.constant 0 : index
    %108 = vector.load %arg2[%c7, %c0_50] : memref<16x128xf32, #tpu.memory_space<vmem>>, vector<1x128xf32>
    %cst_51 = arith.constant 9.99999974E-6 : f32
    %109 = vector.broadcast %cst_51 : f32 to vector<1x128xf32>
    %110 = arith.addf %106, %109 : vector<1x128xf32>
    %111 = math.rsqrt %110 : vector<1x128xf32>
    %112 = arith.mulf %107, %111 : vector<1x128xf32>
    %113 = arith.mulf %97, %112 : vector<1x128xf32>
    %114 = arith.subf %108, %113 : vector<1x128xf32>
    %115 = vector.broadcast %112 : vector<1x128xf32> to vector<64x128xf32>
    %116 = arith.mulf %93, %115 : vector<64x128xf32>
    %117 = vector.broadcast %114 : vector<1x128xf32> to vector<64x128xf32>
    %118 = arith.addf %116, %117 : vector<64x128xf32>
    %cst_52 = arith.constant 0.000000e+00 : f32
    %119 = vector.broadcast %cst_52 : f32 to vector<64x128xf32>
    %120 = arith.maximumf %118, %119 : vector<64x128xf32>
    %c4_53 = arith.constant 4 : index
    %c0_54 = arith.constant 0 : index
    %c0_55 = arith.constant 0 : index
    %121 = vector.load %arg1[%c4_53, %c0_54, %c0_55] : memref<6x128x128xf32, #tpu.memory_space<vmem>>, vector<1x128x128xf32>
    %122 = vector.shape_cast %121 : vector<1x128x128xf32> to vector<128x128xf32>
    %cst_56 = arith.constant dense<0.000000e+00> : vector<64x128xf32>
    %123 = tpu.matmul %120, %122, %cst_56 {dimension_numbers = #tpu.dot_dimension_numbers<[1], [0], [0], [1], [0, 0, 1, 1], [], []>} : vector<64x128xf32>, vector<128x128xf32>, vector<64x128xf32> -> vector<64x128xf32>
    %cst_57 = arith.constant dense<0.000000e+00> : vector<128xf32>
    %124 = vector.multi_reduction <add>, %123, %cst_57 [0] : vector<64x128xf32> to vector<128xf32>
    %125 = vector.shape_cast %124 : vector<128xf32> to vector<1x128xf32>
    %cst_58 = arith.constant 6.400000e+01 : f32
    %126 = vector.broadcast %cst_58 : f32 to vector<1x128xf32>
    %127 = arith.divf %125, %126 : vector<1x128xf32>
    %128 = arith.mulf %123, %123 : vector<64x128xf32>
    %cst_59 = arith.constant dense<0.000000e+00> : vector<128xf32>
    %129 = vector.multi_reduction <add>, %128, %cst_59 [0] : vector<64x128xf32> to vector<128xf32>
    %130 = vector.shape_cast %129 : vector<128xf32> to vector<1x128xf32>
    %cst_60 = arith.constant 6.400000e+01 : f32
    %131 = vector.broadcast %cst_60 : f32 to vector<1x128xf32>
    %132 = arith.divf %130, %131 : vector<1x128xf32>
    %133 = arith.mulf %127, %127 : vector<1x128xf32>
    %134 = arith.subf %132, %133 : vector<1x128xf32>
    %cst_61 = arith.constant 0.000000e+00 : f32
    %135 = vector.broadcast %cst_61 : f32 to vector<1x128xf32>
    %136 = arith.maximumf %134, %135 : vector<1x128xf32>
    %c8 = arith.constant 8 : index
    %c0_62 = arith.constant 0 : index
    %137 = vector.load %arg2[%c8, %c0_62] : memref<16x128xf32, #tpu.memory_space<vmem>>, vector<1x128xf32>
    %c9 = arith.constant 9 : index
    %c0_63 = arith.constant 0 : index
    %138 = vector.load %arg2[%c9, %c0_63] : memref<16x128xf32, #tpu.memory_space<vmem>>, vector<1x128xf32>
    %cst_64 = arith.constant 9.99999974E-6 : f32
    %139 = vector.broadcast %cst_64 : f32 to vector<1x128xf32>
    %140 = arith.addf %136, %139 : vector<1x128xf32>
    %141 = math.rsqrt %140 : vector<1x128xf32>
    %142 = arith.mulf %137, %141 : vector<1x128xf32>
    %143 = arith.mulf %127, %142 : vector<1x128xf32>
    %144 = arith.subf %138, %143 : vector<1x128xf32>
    %145 = vector.broadcast %142 : vector<1x128xf32> to vector<64x128xf32>
    %146 = arith.mulf %123, %145 : vector<64x128xf32>
    %147 = vector.broadcast %144 : vector<1x128xf32> to vector<64x128xf32>
    %148 = arith.addf %146, %147 : vector<64x128xf32>
    %cst_65 = arith.constant 0.000000e+00 : f32
    %149 = vector.broadcast %cst_65 : f32 to vector<64x128xf32>
    %150 = arith.maximumf %148, %149 : vector<64x128xf32>
    %c10 = arith.constant 10 : index
    %c0_66 = arith.constant 0 : index
    %151 = vector.load %arg2[%c10, %c0_66] : memref<16x128xf32, #tpu.memory_space<vmem>>, vector<1x128xf32>
    %c5_67 = arith.constant 5 : index
    %c0_68 = arith.constant 0 : index
    %c0_69 = arith.constant 0 : index
    %152 = vector.load %arg1[%c5_67, %c0_68, %c0_69] : memref<6x128x128xf32, #tpu.memory_space<vmem>>, vector<1x128x128xf32>
    %153 = vector.shape_cast %152 : vector<1x128x128xf32> to vector<128x128xf32>
    %cst_70 = arith.constant dense<0.000000e+00> : vector<64x128xf32>
    %154 = tpu.matmul %150, %153, %cst_70 {dimension_numbers = #tpu.dot_dimension_numbers<[1], [0], [0], [1], [0, 0, 1, 1], [], []>} : vector<64x128xf32>, vector<128x128xf32>, vector<64x128xf32> -> vector<64x128xf32>
    %155 = vector.broadcast %151 : vector<1x128xf32> to vector<64x128xf32>
    %156 = arith.addf %154, %155 : vector<64x128xf32>
    %157 = arith.negf %156 : vector<64x128xf32>
    %158 = math.exp %157 : vector<64x128xf32>
    %cst_71 = arith.constant 1.000000e+00 : f32
    %159 = vector.broadcast %cst_71 : f32 to vector<64x128xf32>
    %160 = arith.addf %159, %158 : vector<64x128xf32>
    %161 = arith.divf %159, %160 : vector<64x128xf32>
    %c0_72 = arith.constant 0 : index
    %c0_73 = arith.constant 0 : index
    %162 = vector.load %arg3[%c0_72, %c0_73] : memref<64x128xf32, #tpu.memory_space<vmem>>, vector<64x128xf32>
    tpu.vector_store %arg3[%c0_72, %c0_73], %161 {strides = array<i32>} : memref<64x128xf32, #tpu.memory_space<vmem>>, vector<64x128xf32>,
    return
  }
}

</mosaic_0001>

<bundles_post_ra>
// kernel: generator_forward.1
= control target key start
LH: loop header
LB: loop body
LE: loop exit
PB: predicated region body
PF: predicated region fallthrough
CT: control target
= control target key end

     0   :  { %8 = vsyncpa [#allocation3], 0  ;;  %s1902_s12 = smov [#allocation2]   ;;  %s2030_s0 = inlined_call_operand.vmem [shape: f32[64,128], index: 0, kind: input, shape index: {}]   ;;  %s2031_s1 = inlined_call_operand.hbm [shape: f32[6,128,128], index: 1, kind: input, shape index: {}]   ;;  %s2032_s2 = inlined_call_operand.vmem [shape: f32[16,128], index: 2, kind: input, shape index: {}]   ;;  %s2033_s3 = inlined_call_operand.vmem [shape: f32[64,128], index: 3, kind: output, shape index: {}]  }
   0x1   :  { %s16_s13 = sshll.u32 %s1902_s12, 4  ;;  %s1878_s16 = scalar_lea.hbm %s2031_s1, 12288  ;;  %s17_s13 = int_to_ptr.vmem [resolvable:$true] %s16_s13 }
   0x2   :  { %p1879_p0 = scmp.ne.s32.totalorder %s2031_s1, %s1878_s16  ;;  %p1882_p1 = scmp.lt.u32.totalorder %s1878_s16, %s2031_s1 }
   0x4   :  { %p1884_p2 = pnand %p1882_p1, %p1879_p0 }
   0x6   :  { %1887 = shalt.err (!%p1884_p2)
}
   0x7   :  { %s1888_s21 = scalar_lea.vmem %s17_s13, 12288  ;;  %p1893_p4 = scmp.lt.s32.totalorder %s17_s13, %s17_s13 }
   0x8   :  { %p1889_p3 = scmp.ne.s32.totalorder %s17_s13, %s1888_s21  ;;  %p1894_p5 = scmp.lt.s32.totalorder %s1888_s21, %s1888_s21 }
   0xa   :  { %p1895_p6 = por %p1894_p5, %p1893_p4 }
   0xc   :  { %p1896_p7 = pnand %p1895_p6, %p1889_p3 }
   0xe   :  { %1899 = shalt.err (!%p1896_p7)
}
   0xf   :  { %s1903_s22 = smov 128   ;;  %s1904_s23 = smov 8  }
  0x10   :  { %22 = dma.hbm_to_vmem [thread:$0]  %s2031_s1, 12288, %s17_s13, [#allocation3], %s1903_s22, %s1903_s22, %s1904_s23  }
  0x11   :  { %1900 = dma.done.wait [#allocation3], 12288  }
  0x12   :  { %1901 = vsyncadd [#allocation3], 4294955008  ;;  %v36_v0 = vld [vmem:[#allocation2] sm:$0xff]  ;;  %v37_v1 = vld [vmem:[#allocation2 + $0x8] sm:$0xff] }
  0x13   :  { %v38_v2 = vld [vmem:[#allocation2 + $0x10] sm:$0xff]  ;;  %v1641_v3 = vpack.c.bf16 %v37_v1, %v36_v0  ;;  %v39_v4 = vld [vmem:[#allocation2 + $0x18] sm:$0xff]  ;;  %v40_v6 = vld [vmem:[#allocation2 + $0x20] sm:$0xff] }
  0x14   :  { %v1645_v5 = vpack.c.bf16 %v39_v4, %v38_v2  ;;  %v41_v7 = vld [vmem:[#allocation2 + $0x28] sm:$0xff]  ;;  %v28_v9 = vld [vmem:[%s2030_s0] sm:$0xff]  ;;  %v42_v10 = vld [vmem:[#allocation2 + $0x30] sm:$0xff] }
  0x15   :  { %1642 = vmatprep.subr.bf16.mxu0 %v1641_v3  ;;  %v1649_v8 = vpack.c.bf16 %v41_v7, %v40_v6  ;;  %v43_v11 = vld [vmem:[#allocation2 + $0x38] sm:$0xff]  ;;  %1409 = vmatprep.mubr.f32.mxu0 %v28_v9  ;;  %v44_v13 = vld [vmem:[#allocation2 + $0x40] sm:$0xff]  ;;  %v45_v14 = vld [vmem:[#allocation2 + $0x48] sm:$0xff] }
  0x16   :  { %1644 = vmatpush3.bf16.msra.mxu0 %v1641_v3  ;;  %v1653_v12 = vpack.c.bf16 %v43_v11, %v42_v10  ;;  %v1657_v15 = vpack.c.bf16 %v45_v14, %v44_v13  ;;  %v46_v16 = vld [vmem:[#allocation2 + $0x50] sm:$0xff]  ;;  %v47_v17 = vld [vmem:[#allocation2 + $0x58] sm:$0xff]  ;;  %v48_v19 = vld [vmem:[#allocation2 + $0x60] sm:$0xff] }
  0x17   :  { %1646 = vmatprep.subr.bf16.mxu0 %v1645_v5  ;;  %v1661_v18 = vpack.c.bf16 %v47_v17, %v46_v16  ;;  %v49_v20 = vld [vmem:[#allocation2 + $0x68] sm:$0xff]  ;;  %v50_v22 = vld [vmem:[#allocation2 + $0x70] sm:$0xff]  ;;  %v51_v23 = vld [vmem:[#allocation2 + $0x78] sm:$0xff] }
  0x18   :  { %v1665_v21 = vpack.c.bf16 %v49_v20, %v48_v19  ;;  %v1669_v24 = vpack.c.bf16 %v51_v23, %v50_v22  ;;  %v29_v25 = vld [vmem:[%s2030_s0 + $0x8] sm:$0xff]  ;;  %v30_v26 = vld [vmem:[%s2030_s0 + $0x10] sm:$0xff]  ;;  %v31_v27 = vld [vmem:[%s2030_s0 + $0x18] sm:$0xff] }
  0x19   :  { %v32_v28 = vld [vmem:[%s2030_s0 + $0x20] sm:$0xff]  ;;  %v33_v29 = vld [vmem:[%s2030_s0 + $0x28] sm:$0xff]  ;;  %v34_v30 = vld [vmem:[%s2030_s0 + $0x30] sm:$0xff] }
  0x1a   :  { %1648 = vmatpush3.bf16.msra.mxu0 %v1645_v5  ;;  %v35_v31 = vld [vmem:[%s2030_s0 + $0x38] sm:$0xff]  ;;  %v237_v32 = vld [vmem:[#allocation2 + $0x80] sm:$0xff]  ;;  %v238_v33 = vld [vmem:[#allocation2 + $0x88] sm:$0xff] }
  0x1b   :  { %1650 = vmatprep.subr.bf16.mxu0 %v1649_v8  ;;  %v1673_v34 = vpack.c.bf16 %v238_v33, %v237_v32  ;;  %v239_v35 = vld [vmem:[#allocation2 + $0x90] sm:$0xff]  ;;  %v240_v36 = vld [vmem:[#allocation2 + $0x98] sm:$0xff]  ;;  %v241_v38 = vld [vmem:[#allocation2 + $0xa0] sm:$0xff] }
  0x1c   :  { %v1677_v37 = vpack.c.bf16 %v240_v36, %v239_v35  ;;  %v242_v39 = vld [vmem:[#allocation2 + $0xa8] sm:$0xff]  ;;  %v243_v41 = vld [vmem:[#allocation2 + $0xb0] sm:$0xff]  ;;  %v244_v42 = vld [vmem:[#allocation2 + $0xb8] sm:$0xff] }
  0x1d   :  { %1674 = vmatprep.subr.bf16.mxu1 %v1673_v34  ;;  %v1681_v40 = vpack.c.bf16 %v242_v39, %v241_v38  ;;  %v1685_v43 = vpack.c.bf16 %v244_v42, %v243_v41  ;;  %v245_v44 = vld [vmem:[#allocation2 + $0xc0] sm:$0xff]  ;;  %v246_v45 = vld [vmem:[#allocation2 + $0xc8] sm:$0xff]  ;;  %v247_v47 = vld [vmem:[#allocation2 + $0xd0] sm:$0xff] }
  0x1e   :  { %1652 = vmatpush3.bf16.msra.mxu0 %v1649_v8  ;;  %1676 = vmatpush3.bf16.msra.mxu1 %v1673_v34  ;;  %v1689_v46 = vpack.c.bf16 %v246_v45, %v245_v44  ;;  %v248_v48 = vld [vmem:[#allocation2 + $0xd8] sm:$0xff]  ;;  %v249_v50 = vld [vmem:[#allocation2 + $0xe0] sm:$0xff]  ;;  %v250_v51 = vld [vmem:[#allocation2 + $0xe8] sm:$0xff] }
  0x1f   :  { %1654 = vmatprep.subr.bf16.mxu0 %v1653_v12  ;;  %1678 = vmatprep.subr.bf16.mxu1 %v1677_v37  ;;  %v1693_v49 = vpack.c.bf16 %v248_v48, %v247_v47  ;;  %v1697_v52 = vpack.c.bf16 %v250_v51, %v249_v50  ;;  %v251_v53 = vld [vmem:[#allocation2 + $0xf0] sm:$0xff]  ;;  %v252_v54 = vld [vmem:[#allocation2 + $0xf8] sm:$0xff]  ;;  %v197_v42 = vld [vmem:[%s2032_s2] sm:$0x1] }
  0x20   :  { %v1701_v55 = vpack.c.bf16 %v252_v54, %v251_v53 }
  0x22   :  { %1656 = vmatpush3.bf16.msra.mxu0 %v1653_v12  ;;  %1680 = vmatpush3.bf16.msra.mxu1 %v1677_v37 }
  0x23   :  { %1658 = vmatprep.subr.bf16.mxu0 %v1657_v15  ;;  %1682 = vmatprep.subr.bf16.mxu1 %v1681_v40 }
  0x26   :  { %1660 = vmatpush3.bf16.msra.mxu0 %v1657_v15  ;;  %1684 = vmatpush3.bf16.msra.mxu1 %v1681_v40  ;;  %v204_v40 = vlaneseq }
  0x27   :  { %1662 = vmatprep.subr.bf16.mxu0 %v1661_v18  ;;  %1686 = vmatprep.subr.bf16.mxu1 %v1685_v43 }
  0x28   :  { %v205_v41 = vshrl.u32 %v204_v40, 7 }
  0x2a   :  { %1664 = vmatpush3.bf16.msra.mxu0 %v1661_v18  ;;  %1688 = vmatpush3.bf16.msra.mxu1 %v1685_v43  ;;  %v1964_v43 = vsub.s32 0, %v205_v41 }
  0x2b   :  { %1666 = vmatprep.subr.bf16.mxu0 %v1665_v21  ;;  %1690 = vmatprep.subr.bf16.mxu1 %v1689_v46 }
  0x2e   :  { %1668 = vmatpush3.bf16.msra.mxu0 %v1665_v21  ;;  %1692 = vmatpush3.bf16.msra.mxu1 %v1689_v46  ;;  %v198_v46 = vld [vmem:[%s2032_s2 + $0x1] sm:$0x1] }
  0x2f   :  { %1670 = vmatprep.subr.bf16.mxu0 %v1669_v24  ;;  %1694 = vmatprep.subr.bf16.mxu1 %v1693_v49 }
  0x32   :  { %1672 = vmatpush3.bf16.msra.mxu0 %v1669_v24  ;;  %1696 = vmatpush3.bf16.msra.mxu1 %v1693_v49 }
  0x33   :  { %1698 = vmatprep.subr.bf16.mxu1 %v1697_v52 }
  0x35   :  { %1410 = vmatmul.mubr.f32.vlgmr.msra.gmra.mrb[0].mxu0 %v29_v25 }
  0x36   :  { %1412 = vmatprep.mubr.f32.mxu0 %v30_v26  ;;  %1700 = vmatpush3.bf16.msra.mxu1 %v1697_v52 }
  0x37   :  { %1702 = vmatprep.subr.bf16.mxu1 %v1701_v55 }
  0x39   :  { %1413 = vmatmul.mubr.f32.gmra.mrb[2].mxu0 %v31_v27 }
  0x3a   :  { %1415 = vmatprep.mubr.f32.mxu0 %v32_v28  ;;  %1704 = vmatpush3.bf16.msra.mxu1 %v1701_v55 }
  0x3d   :  { %1416 = vmatmul.mubr.f32.gmra.mrb[4].mxu0 %v33_v29 }
  0x3e   :  { %1418 = vmatprep.mubr.f32.mxu0 %v34_v30 }
  0x41   :  { %1419 = vmatmul.mubr.f32.gmra.mrb[6].mxu0 %v35_v31 }
 0x108   :  { %v1411_v56 = vpop.f32.mrb[0].mxu0 }
 0x109   :  { %v173_v57 = vmul.f32 %v1411_v56, %v1411_v56  ;;  %v118_v58 = vpop.f32.mrb[1].mxu0 }
 0x10a   :  { %v157_v59 = vadd.f32 %v1411_v56, %v118_v58  ;;  %v172_v60 = vmul.f32 %v118_v58, %v118_v58 }
 0x10c   :  { %v180_v61 = vadd.f32 %v173_v57, %v172_v60  ;;  %v1414_v62 = vpop.f32.mrb[2].mxu0 }
 0x10d   :  { %v128_v63 = vpop.f32.mrb[3].mxu0  ;;  %v175_v2 = vmul.f32 %v1414_v62, %v1414_v62 }
 0x10e   :  { %v158_v0 = vadd.f32 %v157_v59, %v128_v63  ;;  %v174_v1 = vmul.f32 %v128_v63, %v128_v63 }
 0x110   :  { %v181_v3 = vadd.f32 %v180_v61, %v174_v1  ;;  %v1417_v4 = vpop.f32.mrb[4].mxu0  ;;  %v159_v5 = vadd.f32 %v1414_v62, %v158_v0 }
 0x111   :  { %v138_v6 = vpop.f32.mrb[5].mxu0  ;;  %v177_v10 = vmul.f32 %v1417_v4, %v1417_v4 }
 0x112   :  { %v160_v7 = vadd.f32 %v159_v5, %v138_v6  ;;  %v176_v8 = vmul.f32 %v138_v6, %v138_v6  ;;  %v182_v9 = vadd.f32 %v181_v3, %v175_v2 }
 0x114   :  { %v183_v11 = vadd.f32 %v182_v9, %v176_v8  ;;  %v1420_v12 = vpop.f32.mrb[6].mxu0  ;;  %v161_v13 = vadd.f32 %v1417_v4, %v160_v7 }
 0x115   :  { %v148_v14 = vpop.f32.mrb[7].mxu0  ;;  %v179_v18 = vmul.f32 %v1420_v12, %v1420_v12 }
 0x116   :  { %v162_v15 = vadd.f32 %v161_v13, %v148_v14  ;;  %v178_v16 = vmul.f32 %v148_v14, %v148_v14  ;;  %v184_v17 = vadd.f32 %v183_v11, %v177_v10  ;;  %v437_v11 = vld [vmem:[#allocation2 + $0x100] sm:$0xff] }
 0x118   :  { %v163_v19 = vadd.f32 %v1420_v12, %v162_v15  ;;  %v185_v20 = vadd.f32 %v184_v17, %v178_v16  ;;  %v440_v15 = vld [vmem:[#allocation2 + $0x118] sm:$0xff]  ;;  %v441_v17 = vld [vmem:[#allocation2 + $0x120] sm:$0xff] }
 0x11a   :  { %v164_v21 = vrot.slane %v163_v19, 4  ;;  %v186_v22 = vadd.f32 %v185_v20, %v179_v18  ;;  %v442_v18 = vld [vmem:[#allocation2 + $0x128] sm:$0xff]  ;;  %v443_v20 = vld [vmem:[#allocation2 + $0x130] sm:$0xff] }
 0x11c   :  { %v165_v23 = vadd.f32 %v164_v21, %v163_v19  ;;  %v187_v24 = vrot.slane %v186_v22, 4  ;;  %v1713_v19 = vpack.c.bf16 %v442_v18, %v441_v17  ;;  %v444_v21 = vld [vmem:[#allocation2 + $0x138] sm:$0xff] }
 0x11e   :  { %v166_v25 = vrot.slane %v165_v23, 2  ;;  %v188_v26 = vadd.f32 %v187_v24, %v186_v22  ;;  %v1717_v22 = vpack.c.bf16 %v444_v21, %v443_v20  ;;  %v446_v24 = vld [vmem:[#allocation2 + $0x148] sm:$0xff]  ;;  %v397_v20 = vld [vmem:[%s2032_s2 + $0x2] sm:$0x1] }
 0x120   :  { %v167_v27 = vadd.f32 %v166_v25, %v165_v23  ;;  %v189_v28 = vrot.slane %v188_v26, 2  ;;  %v445_v23 = vld [vmem:[#allocation2 + $0x140] sm:$0xff] }
 0x121   :  { %v1721_v25 = vpack.c.bf16 %v446_v24, %v445_v23  ;;  %v398_v23 = vld [vmem:[%s2032_s2 + $0x3] sm:$0x1] }
 0x122   :  { %v168_v29 = vrot.slane %v167_v27, 1  ;;  %v190_v30 = vadd.f32 %v189_v28, %v188_v26  ;;  %v447_v26 = vld [vmem:[#allocation2 + $0x150] sm:$0xff] }
 0x124   :  { %v169_v31 = vadd.f32 %v168_v29, %v167_v27  ;;  %v191_v32 = vrot.slane %v190_v30, 1  ;;  %v448_v27 = vld [vmem:[#allocation2 + $0x158] sm:$0xff]  ;;  %v449_v29 = vld [vmem:[#allocation2 + $0x160] sm:$0xff] }
 0x125   :  { %v1725_v28 = vpack.c.bf16 %v448_v27, %v447_v26 }
 0x126   :  { %v171_v33 = vmul.f32 0.015625, %v169_v31  ;;  %v192_v34 = vadd.f32 %v191_v32, %v190_v30  ;;  %v450_v30 = vld [vmem:[#allocation2 + $0x168] sm:$0xff]  ;;  %v451_v32 = vld [vmem:[#allocation2 + $0x170] sm:$0xff] }
 0x127   :  { %v1729_v31 = vpack.c.bf16 %v450_v30, %v449_v29 }
 0x128   :  { %v193_v35 = vmul.f32 0.015625, %v192_v34  ;;  %v194_v36 = vmul.f32 %v171_v33, %v171_v33 }
 0x12a   :  { %v195_v37 = vsub.f32 %v193_v35, %v194_v36 }
 0x12c   :  { %v196_v38 = vmax.f32 %v195_v37, 0.0 }
 0x12e   :  { %v199_v39 = vadd.f32 1e-05, %v196_v38 }
 0x130   :  { %1836 = vrsqrt.f32 %v199_v39 }
 0x13a   :  { %v1837_v44 = vpop.eup %1836 }
 0x13b   :  { %v201_v45 = vmul.f32 %v1837_v44, %v197_v42 }
 0x13d   :  { %v202_v47 = vmul.f32 %v201_v45, %v171_v33  ;;  %v207_v48 = vrot.slane %v201_v45, %v1964_v43  ;;  %v452_v33 = vld [vmem:[#allocation2 + $0x178] sm:$0xff] }
 0x13e   :  { %v1733_v34 = vpack.c.bf16 %v452_v33, %v451_v32 }
 0x13f   :  { %v203_v49 = vsub.f32 %v198_v46, %v202_v47  ;;  %v214_v50 = vmul.f32 %v207_v48, %v148_v14  ;;  %v208_v51 = vmul.f32 %v207_v48, %v118_v58  ;;  %v209_v52 = vmul.f32 %v1411_v56, %v207_v48  ;;  %v439_v14 = vld [vmem:[#allocation2 + $0x110] sm:$0xff] }
 0x140   :  { %v210_v53 = vmul.f32 %v207_v48, %v128_v63  ;;  %v211_v54 = vmul.f32 %v1414_v62, %v207_v48  ;;  %v212_v55 = vmul.f32 %v207_v48, %v138_v6  ;;  %v213_v57 = vmul.f32 %v1417_v4, %v207_v48 }
 0x141   :  { %v219_v59 = vrot.slane %v203_v49, %v1964_v43  ;;  %v215_v60 = vmul.f32 %v1420_v12, %v207_v48  ;;  %v438_v12 = vld [vmem:[#allocation2 + $0x108] sm:$0xff]  ;;  %v1709_v16 = vpack.c.bf16 %v440_v15, %v439_v14 }
 0x142   :  { %v1705_v13 = vpack.c.bf16 %v438_v12, %v437_v11 }
 0x143   :  { %v220_v61 = vadd.f32 %v219_v59, %v208_v51  ;;  %v221_v0 = vadd.f32 %v219_v59, %v209_v52  ;;  %v222_v1 = vadd.f32 %v219_v59, %v210_v53  ;;  %v223_v2 = vadd.f32 %v219_v59, %v211_v54 }
 0x144   :  { %v224_v3 = vadd.f32 %v219_v59, %v212_v55  ;;  %v225_v5 = vadd.f32 %v219_v59, %v213_v57  ;;  %v226_v7 = vadd.f32 %v219_v59, %v214_v50  ;;  %v227_v8 = vadd.f32 %v219_v59, %v215_v60  ;;  %1706 = vmatprep.subr.bf16.mxu0 %v1705_v13 }
 0x145   :  { %v228_v9 = vmax.f32 %v220_v61, 0.0  ;;  %v229_v10 = vmax.f32 %v221_v0, 0.0  ;;  %v230_v58 = vmax.f32 %v222_v1, 0.0  ;;  %v231_v56 = vmax.f32 %v223_v2, 0.0  ;;  %1708 = vmatpush3.bf16.msra.mxu0 %v1705_v13 }
 0x146   :  { %v232_v62 = vmax.f32 %v224_v3, 0.0  ;;  %v233_v63 = vmax.f32 %v225_v5, 0.0  ;;  %v234_v4 = vmax.f32 %v226_v7, 0.0  ;;  %v235_v6 = vmax.f32 %v227_v8, 0.0  ;;  %1710 = vmatprep.subr.bf16.mxu0 %v1709_v16 }
 0x147   :  { %1453 = vmatprep.mubr.f32.mxu1 %v228_v9 }
 0x148   :  { %1454 = vmatmul.mubr.f32.vlgmr.msra.gmra.mrb[0].mxu1 %v229_v10 }
 0x149   :  { %1456 = vmatprep.mubr.f32.mxu1 %v230_v58  ;;  %1712 = vmatpush3.bf16.msra.mxu0 %v1709_v16 }
 0x14a   :  { %1714 = vmatprep.subr.bf16.mxu0 %v1713_v19 }
 0x14c   :  { %1457 = vmatmul.mubr.f32.gmra.mrb[2].mxu1 %v231_v56 }
 0x14d   :  { %1459 = vmatprep.mubr.f32.mxu1 %v232_v62  ;;  %1716 = vmatpush3.bf16.msra.mxu0 %v1713_v19 }
 0x14e   :  { %1718 = vmatprep.subr.bf16.mxu0 %v1717_v22 }
 0x150   :  { %1460 = vmatmul.mubr.f32.gmra.mrb[4].mxu1 %v233_v63 }
 0x151   :  { %1462 = vmatprep.mubr.f32.mxu1 %v234_v4  ;;  %1720 = vmatpush3.bf16.msra.mxu0 %v1717_v22 }
 0x152   :  { %1722 = vmatprep.subr.bf16.mxu0 %v1721_v25 }
 0x154   :  { %1463 = vmatmul.mubr.f32.gmra.mrb[6].mxu1 %v235_v6 }
 0x155   :  { %1724 = vmatpush3.bf16.msra.mxu0 %v1721_v25 }
 0x156   :  { %1726 = vmatprep.subr.bf16.mxu0 %v1725_v28 }
 0x159   :  { %1728 = vmatpush3.bf16.msra.mxu0 %v1725_v28 }
 0x15a   :  { %1730 = vmatprep.subr.bf16.mxu0 %v1729_v31 }
 0x15d   :  { %1732 = vmatpush3.bf16.msra.mxu0 %v1729_v31 }
 0x15e   :  { %1734 = vmatprep.subr.bf16.mxu0 %v1733_v34 }
 0x161   :  { %1736 = vmatpush3.bf16.msra.mxu0 %v1733_v34 }
 0x21b   :  { %v1455_v35 = vpop.f32.mrb[0].mxu1 }
 0x21c   :  { %v373_v36 = vmul.f32 %v1455_v35, %v1455_v35  ;;  %v319_v37 = vpop.f32.mrb[1].mxu1 }
 0x21d   :  { %v358_v38 = vadd.f32 %v1455_v35, %v319_v37  ;;  %v372_v39 = vmul.f32 %v319_v37, %v319_v37 }
 0x21f   :  { %v380_v40 = vadd.f32 %v373_v36, %v372_v39  ;;  %v1458_v41 = vpop.f32.mrb[2].mxu1 }
 0x220   :  { %v329_v42 = vpop.f32.mrb[3].mxu1  ;;  %v375_v46 = vmul.f32 %v1458_v41, %v1458_v41 }
 0x221   :  { %v359_v44 = vadd.f32 %v358_v38, %v329_v42  ;;  %v374_v45 = vmul.f32 %v329_v42, %v329_v42 }
 0x223   :  { %v381_v47 = vadd.f32 %v380_v40, %v374_v45  ;;  %v1461_v48 = vpop.f32.mrb[4].mxu1  ;;  %v360_v49 = vadd.f32 %v1458_v41, %v359_v44 }
 0x224   :  { %v339_v50 = vpop.f32.mrb[5].mxu1  ;;  %v377_v54 = vmul.f32 %v1461_v48, %v1461_v48 }
 0x225   :  { %v361_v51 = vadd.f32 %v360_v49, %v339_v50  ;;  %v376_v52 = vmul.f32 %v339_v50, %v339_v50  ;;  %v382_v53 = vadd.f32 %v381_v47, %v375_v46 }
 0x227   :  { %v383_v55 = vadd.f32 %v382_v53, %v376_v52  ;;  %v1464_v57 = vpop.f32.mrb[6].mxu1  ;;  %v362_v59 = vadd.f32 %v1461_v48, %v361_v51  ;;  %v637_v53 = vld [vmem:[#allocation2 + $0x180] sm:$0xff] }
 0x228   :  { %v349_v60 = vpop.f32.mrb[7].mxu1  ;;  %v379_v2 = vmul.f32 %v1464_v57, %v1464_v57 }
 0x229   :  { %v363_v61 = vadd.f32 %v362_v59, %v349_v60  ;;  %v378_v0 = vmul.f32 %v349_v60, %v349_v60  ;;  %v384_v1 = vadd.f32 %v383_v55, %v377_v54  ;;  %v638_v54 = vld [vmem:[#allocation2 + $0x188] sm:$0xff]  ;;  %v640_v59 = vld [vmem:[#allocation2 + $0x198] sm:$0xff] }
 0x22a   :  { %v1737_v55 = vpack.c.bf16 %v638_v54, %v637_v53 }
 0x22b   :  { %v364_v3 = vadd.f32 %v1464_v57, %v363_v61  ;;  %v385_v5 = vadd.f32 %v384_v1, %v378_v0  ;;  %v641_v61 = vld [vmem:[#allocation2 + $0x1a0] sm:$0xff]  ;;  %v642_v0 = vld [vmem:[#allocation2 + $0x1a8] sm:$0xff] }
 0x22c   :  { %1738 = vmatprep.subr.bf16.mxu1 %v1737_v55  ;;  %v1745_v1 = vpack.c.bf16 %v642_v0, %v641_v61 }
 0x22d   :  { %v365_v7 = vrot.slane %v364_v3, 4  ;;  %v386_v8 = vadd.f32 %v385_v5, %v379_v2  ;;  %1740 = vmatpush3.bf16.msra.mxu1 %v1737_v55  ;;  %v643_v2 = vld [vmem:[#allocation2 + $0x1b0] sm:$0xff] }
 0x22f   :  { %v366_v9 = vadd.f32 %v365_v7, %v364_v3  ;;  %v387_v10 = vrot.slane %v386_v8, 4  ;;  %v644_v3 = vld [vmem:[#allocation2 + $0x1b8] sm:$0xff]  ;;  %v645_v7 = vld [vmem:[#allocation2 + $0x1c0] sm:$0xff] }
 0x230   :  { %v1749_v5 = vpack.c.bf16 %v644_v3, %v643_v2  ;;  %v597_v2 = vld [vmem:[%s2032_s2 + $0x4] sm:$0x1] }
 0x231   :  { %v367_v58 = vrot.slane %v366_v9, 2  ;;  %v388_v56 = vadd.f32 %v387_v10, %v386_v8  ;;  %v646_v8 = vld [vmem:[#allocation2 + $0x1c8] sm:$0xff]  ;;  %v647_v10 = vld [vmem:[#allocation2 + $0x1d0] sm:$0xff] }
 0x233   :  { %v368_v62 = vadd.f32 %v367_v58, %v366_v9  ;;  %v389_v63 = vrot.slane %v388_v56, 2  ;;  %v1753_v9 = vpack.c.bf16 %v646_v8, %v645_v7  ;;  %v648_v58 = vld [vmem:[#allocation2 + $0x1d8] sm:$0xff]  ;;  %v598_v7 = vld [vmem:[%s2032_s2 + $0x5] sm:$0x1] }
 0x235   :  { %v369_v4 = vrot.slane %v368_v62, 1  ;;  %v390_v6 = vadd.f32 %v389_v63, %v388_v56  ;;  %v1757_v56 = vpack.c.bf16 %v648_v58, %v647_v10  ;;  %v650_v63 = vld [vmem:[#allocation2 + $0x1e8] sm:$0xff] }
 0x237   :  { %v370_v11 = vadd.f32 %v369_v4, %v368_v62  ;;  %v391_v12 = vrot.slane %v390_v6, 1  ;;  %v649_v62 = vld [vmem:[#allocation2 + $0x1e0] sm:$0xff] }
 0x238   :  { %v1761_v4 = vpack.c.bf16 %v650_v63, %v649_v62 }
 0x239   :  { %v371_v13 = vmul.f32 0.015625, %v370_v11  ;;  %v392_v14 = vadd.f32 %v391_v12, %v390_v6  ;;  %v651_v6 = vld [vmem:[#allocation2 + $0x1f0] sm:$0xff]  ;;  %v652_v11 = vld [vmem:[#allocation2 + $0x1f8] sm:$0xff] }
 0x23a   :  { %v1765_v12 = vpack.c.bf16 %v652_v11, %v651_v6 }
 0x23b   :  { %v393_v15 = vmul.f32 0.015625, %v392_v14  ;;  %v394_v16 = vmul.f32 %v371_v13, %v371_v13 }
 0x23d   :  { %v395_v17 = vsub.f32 %v393_v15, %v394_v16 }
 0x23f   :  { %v396_v18 = vmax.f32 %v395_v17, 0.0 }
 0x241   :  { %v399_v19 = vadd.f32 1e-05, %v396_v18 }
 0x243   :  { %1838 = vrsqrt.f32 %v399_v19 }
 0x24d   :  { %v1839_v21 = vpop.eup %1838 }
 0x24e   :  { %v401_v22 = vmul.f32 %v1839_v21, %v397_v20 }
 0x250   :  { %v402_v24 = vmul.f32 %v401_v22, %v371_v13  ;;  %v407_v25 = vrot.slane %v401_v22, %v1964_v43 }
 0x252   :  { %v403_v26 = vsub.f32 %v398_v23, %v402_v24  ;;  %v414_v27 = vmul.f32 %v407_v25, %v349_v60  ;;  %v408_v28 = vmul.f32 %v407_v25, %v319_v37  ;;  %v409_v29 = vmul.f32 %v1455_v35, %v407_v25 }
 0x253   :  { %v410_v30 = vmul.f32 %v407_v25, %v329_v42  ;;  %v411_v31 = vmul.f32 %v1458_v41, %v407_v25  ;;  %v412_v32 = vmul.f32 %v407_v25, %v339_v50  ;;  %v413_v33 = vmul.f32 %v1461_v48, %v407_v25 }
 0x254   :  { %v419_v34 = vrot.slane %v403_v26, %v1964_v43  ;;  %v415_v36 = vmul.f32 %v1464_v57, %v407_v25  ;;  %v639_v57 = vld [vmem:[#allocation2 + $0x190] sm:$0xff] }
 0x255   :  { %v1741_v60 = vpack.c.bf16 %v640_v59, %v639_v57 }
 0x256   :  { %v420_v38 = vadd.f32 %v419_v34, %v408_v28  ;;  %v421_v39 = vadd.f32 %v419_v34, %v409_v29  ;;  %v422_v40 = vadd.f32 %v419_v34, %v410_v30  ;;  %v423_v44 = vadd.f32 %v419_v34, %v411_v31 }
 0x257   :  { %v424_v45 = vadd.f32 %v419_v34, %v412_v32  ;;  %v425_v46 = vadd.f32 %v419_v34, %v413_v33  ;;  %v426_v47 = vadd.f32 %v419_v34, %v414_v27  ;;  %v427_v49 = vadd.f32 %v419_v34, %v415_v36  ;;  %1742 = vmatprep.subr.bf16.mxu1 %v1741_v60 }
 0x258   :  { %v428_v51 = vmax.f32 %v420_v38, 0.0  ;;  %v429_v52 = vmax.f32 %v421_v39, 0.0  ;;  %v430_v37 = vmax.f32 %v422_v40, 0.0  ;;  %v431_v35 = vmax.f32 %v423_v44, 0.0  ;;  %1744 = vmatpush3.bf16.msra.mxu1 %v1741_v60 }
 0x259   :  { %v432_v41 = vmax.f32 %v424_v45, 0.0  ;;  %v433_v42 = vmax.f32 %v425_v46, 0.0  ;;  %v434_v48 = vmax.f32 %v426_v47, 0.0  ;;  %v435_v50 = vmax.f32 %v427_v49, 0.0  ;;  %1746 = vmatprep.subr.bf16.mxu1 %v1745_v1 }
 0x25a   :  { %1497 = vmatprep.mubr.f32.mxu0 %v428_v51 }
 0x25b   :  { %1498 = vmatmul.mubr.f32.vlgmr.msra.gmra.mrb[8].mxu0 %v429_v52 }
 0x25c   :  { %1500 = vmatprep.mubr.f32.mxu0 %v430_v37  ;;  %1748 = vmatpush3.bf16.msra.mxu1 %v1745_v1 }
 0x25d   :  { %1750 = vmatprep.subr.bf16.mxu1 %v1749_v5 }
 0x25f   :  { %1501 = vmatmul.mubr.f32.gmra.mrb[10].mxu0 %v431_v35 }
 0x260   :  { %1503 = vmatprep.mubr.f32.mxu0 %v432_v41  ;;  %1752 = vmatpush3.bf16.msra.mxu1 %v1749_v5 }
 0x261   :  { %1754 = vmatprep.subr.bf16.mxu1 %v1753_v9 }
 0x263   :  { %1504 = vmatmul.mubr.f32.gmra.mrb[12].mxu0 %v433_v42 }
 0x264   :  { %1506 = vmatprep.mubr.f32.mxu0 %v434_v48  ;;  %1756 = vmatpush3.bf16.msra.mxu1 %v1753_v9 }
 0x265   :  { %1758 = vmatprep.subr.bf16.mxu1 %v1757_v56 }
 0x267   :  { %1507 = vmatmul.mubr.f32.gmra.mrb[14].mxu0 %v435_v50 }
 0x268   :  { %1760 = vmatpush3.bf16.msra.mxu1 %v1757_v56 }
 0x269   :  { %1762 = vmatprep.subr.bf16.mxu1 %v1761_v4 }
 0x26c   :  { %1764 = vmatpush3.bf16.msra.mxu1 %v1761_v4 }
 0x26d   :  { %1766 = vmatprep.subr.bf16.mxu1 %v1765_v12 }
 0x270   :  { %1768 = vmatpush3.bf16.msra.mxu1 %v1765_v12 }
 0x32e   :  { %v1499_v13 = vpop.f32.mrb[8].mxu0 }
 0x32f   :  { %v573_v14 = vmul.f32 %v1499_v13, %v1499_v13  ;;  %v519_v15 = vpop.f32.mrb[9].mxu0 }
 0x330   :  { %v558_v16 = vadd.f32 %v1499_v13, %v519_v15  ;;  %v572_v17 = vmul.f32 %v519_v15, %v519_v15 }
 0x332   :  { %v580_v18 = vadd.f32 %v573_v14, %v572_v17  ;;  %v1502_v19 = vpop.f32.mrb[10].mxu0 }
 0x333   :  { %v529_v20 = vpop.f32.mrb[11].mxu0  ;;  %v575_v23 = vmul.f32 %v1502_v19, %v1502_v19 }
 0x334   :  { %v559_v21 = vadd.f32 %v558_v16, %v529_v20  ;;  %v574_v22 = vmul.f32 %v529_v20, %v529_v20 }
 0x336   :  { %v581_v24 = vadd.f32 %v580_v18, %v574_v22  ;;  %v1505_v25 = vpop.f32.mrb[12].mxu0  ;;  %v560_v26 = vadd.f32 %v1502_v19, %v559_v21 }
 0x337   :  { %v539_v27 = vpop.f32.mrb[13].mxu0  ;;  %v577_v31 = vmul.f32 %v1505_v25, %v1505_v25 }
 0x338   :  { %v561_v28 = vadd.f32 %v560_v26, %v539_v27  ;;  %v576_v29 = vmul.f32 %v539_v27, %v539_v27  ;;  %v582_v30 = vadd.f32 %v581_v24, %v575_v23 }
 0x33a   :  { %v583_v32 = vadd.f32 %v582_v30, %v576_v29  ;;  %v1508_v33 = vpop.f32.mrb[14].mxu0  ;;  %v562_v34 = vadd.f32 %v1505_v25, %v561_v28  ;;  %v837_v30 = vld [vmem:[#allocation2 + $0x200] sm:$0xff] }
 0x33b   :  { %v549_v36 = vpop.f32.mrb[15].mxu0  ;;  %v579_v44 = vmul.f32 %v1508_v33, %v1508_v33 }
 0x33c   :  { %v563_v38 = vadd.f32 %v562_v34, %v549_v36  ;;  %v578_v39 = vmul.f32 %v549_v36, %v549_v36  ;;  %v584_v40 = vadd.f32 %v583_v32, %v577_v31  ;;  %v838_v31 = vld [vmem:[#allocation2 + $0x208] sm:$0xff]  ;;  %v840_v34 = vld [vmem:[#allocation2 + $0x218] sm:$0xff] }
 0x33d   :  { %v1769_v32 = vpack.c.bf16 %v838_v31, %v837_v30 }
 0x33e   :  { %v564_v45 = vadd.f32 %v1508_v33, %v563_v38  ;;  %v585_v46 = vadd.f32 %v584_v40, %v578_v39  ;;  %v841_v38 = vld [vmem:[#allocation2 + $0x220] sm:$0xff]  ;;  %v842_v39 = vld [vmem:[#allocation2 + $0x228] sm:$0xff] }
 0x33f   :  { %1770 = vmatprep.subr.bf16.mxu0 %v1769_v32  ;;  %v1777_v40 = vpack.c.bf16 %v842_v39, %v841_v38 }
 0x340   :  { %v565_v47 = vrot.slane %v564_v45, 4  ;;  %v586_v49 = vadd.f32 %v585_v46, %v579_v44  ;;  %1772 = vmatpush3.bf16.msra.mxu0 %v1769_v32  ;;  %v843_v44 = vld [vmem:[#allocation2 + $0x230] sm:$0xff] }
 0x342   :  { %v566_v51 = vadd.f32 %v565_v47, %v564_v45  ;;  %v587_v52 = vrot.slane %v586_v49, 4  ;;  %v844_v45 = vld [vmem:[#allocation2 + $0x238] sm:$0xff]  ;;  %v845_v47 = vld [vmem:[#allocation2 + $0x240] sm:$0xff] }
 0x343   :  { %v1781_v46 = vpack.c.bf16 %v844_v45, %v843_v44  ;;  %v797_v44 = vld [vmem:[%s2032_s2 + $0x6] sm:$0x1] }
 0x344   :  { %v567_v37 = vrot.slane %v566_v51, 2  ;;  %v588_v35 = vadd.f32 %v587_v52, %v586_v49  ;;  %v846_v49 = vld [vmem:[#allocation2 + $0x248] sm:$0xff]  ;;  %v847_v52 = vld [vmem:[#allocation2 + $0x250] sm:$0xff] }
 0x346   :  { %v568_v41 = vadd.f32 %v567_v37, %v566_v51  ;;  %v589_v42 = vrot.slane %v588_v35, 2  ;;  %v1785_v51 = vpack.c.bf16 %v846_v49, %v845_v47  ;;  %v848_v37 = vld [vmem:[#allocation2 + $0x258] sm:$0xff]  ;;  %v798_v47 = vld [vmem:[%s2032_s2 + $0x7] sm:$0x1] }
 0x348   :  { %v569_v48 = vrot.slane %v568_v41, 1  ;;  %v590_v50 = vadd.f32 %v589_v42, %v588_v35  ;;  %v1789_v35 = vpack.c.bf16 %v848_v37, %v847_v52  ;;  %v850_v42 = vld [vmem:[#allocation2 + $0x268] sm:$0xff] }
 0x34a   :  { %v570_v53 = vadd.f32 %v569_v48, %v568_v41  ;;  %v591_v54 = vrot.slane %v590_v50, 1  ;;  %v849_v41 = vld [vmem:[#allocation2 + $0x260] sm:$0xff] }
 0x34b   :  { %v1793_v48 = vpack.c.bf16 %v850_v42, %v849_v41 }
 0x34c   :  { %v571_v55 = vmul.f32 0.015625, %v570_v53  ;;  %v592_v57 = vadd.f32 %v591_v54, %v590_v50  ;;  %v851_v50 = vld [vmem:[#allocation2 + $0x270] sm:$0xff]  ;;  %v852_v53 = vld [vmem:[#allocation2 + $0x278] sm:$0xff] }
 0x34d   :  { %v1797_v54 = vpack.c.bf16 %v852_v53, %v851_v50 }
 0x34e   :  { %v593_v59 = vmul.f32 0.015625, %v592_v57  ;;  %v594_v60 = vmul.f32 %v571_v55, %v571_v55 }
 0x350   :  { %v595_v61 = vsub.f32 %v593_v59, %v594_v60 }
 0x352   :  { %v596_v0 = vmax.f32 %v595_v61, 0.0 }
 0x354   :  { %v599_v1 = vadd.f32 1e-05, %v596_v0 }
 0x356   :  { %1840 = vrsqrt.f32 %v599_v1 }
 0x360   :  { %v1841_v3 = vpop.eup %1840 }
 0x361   :  { %v601_v5 = vmul.f32 %v1841_v3, %v597_v2 }
 0x363   :  { %v602_v8 = vmul.f32 %v601_v5, %v571_v55  ;;  %v607_v9 = vrot.slane %v601_v5, %v1964_v43 }
 0x365   :  { %v603_v10 = vsub.f32 %v598_v7, %v602_v8  ;;  %v614_v58 = vmul.f32 %v607_v9, %v549_v36  ;;  %v608_v56 = vmul.f32 %v607_v9, %v519_v15  ;;  %v609_v62 = vmul.f32 %v1499_v13, %v607_v9 }
 0x366   :  { %v610_v63 = vmul.f32 %v607_v9, %v529_v20  ;;  %v611_v4 = vmul.f32 %v1502_v19, %v607_v9  ;;  %v612_v6 = vmul.f32 %v607_v9, %v539_v27  ;;  %v613_v11 = vmul.f32 %v1505_v25, %v607_v9 }
 0x367   :  { %v619_v12 = vrot.slane %v603_v10, %v1964_v43  ;;  %v615_v14 = vmul.f32 %v1508_v33, %v607_v9  ;;  %v839_v33 = vld [vmem:[#allocation2 + $0x210] sm:$0xff] }
 0x368   :  { %v1773_v36 = vpack.c.bf16 %v840_v34, %v839_v33 }
 0x369   :  { %v620_v16 = vadd.f32 %v619_v12, %v608_v56  ;;  %v621_v17 = vadd.f32 %v619_v12, %v609_v62  ;;  %v622_v18 = vadd.f32 %v619_v12, %v610_v63  ;;  %v623_v21 = vadd.f32 %v619_v12, %v611_v4 }
 0x36a   :  { %v624_v22 = vadd.f32 %v619_v12, %v612_v6  ;;  %v625_v23 = vadd.f32 %v619_v12, %v613_v11  ;;  %v626_v24 = vadd.f32 %v619_v12, %v614_v58  ;;  %v627_v26 = vadd.f32 %v619_v12, %v615_v14  ;;  %1774 = vmatprep.subr.bf16.mxu0 %v1773_v36 }
 0x36b   :  { %v628_v28 = vmax.f32 %v620_v16, 0.0  ;;  %v629_v29 = vmax.f32 %v621_v17, 0.0  ;;  %v630_v15 = vmax.f32 %v622_v18, 0.0  ;;  %v631_v13 = vmax.f32 %v623_v21, 0.0  ;;  %1776 = vmatpush3.bf16.msra.mxu0 %v1773_v36 }
 0x36c   :  { %v632_v19 = vmax.f32 %v624_v22, 0.0  ;;  %v633_v20 = vmax.f32 %v625_v23, 0.0  ;;  %v634_v25 = vmax.f32 %v626_v24, 0.0  ;;  %v635_v27 = vmax.f32 %v627_v26, 0.0  ;;  %1778 = vmatprep.subr.bf16.mxu0 %v1777_v40 }
 0x36d   :  { %1541 = vmatprep.mubr.f32.mxu1 %v628_v28 }
 0x36e   :  { %1542 = vmatmul.mubr.f32.vlgmr.msra.gmra.mrb[8].mxu1 %v629_v29 }
 0x36f   :  { %1544 = vmatprep.mubr.f32.mxu1 %v630_v15  ;;  %1780 = vmatpush3.bf16.msra.mxu0 %v1777_v40 }
 0x370   :  { %1782 = vmatprep.subr.bf16.mxu0 %v1781_v46 }
 0x372   :  { %1545 = vmatmul.mubr.f32.gmra.mrb[10].mxu1 %v631_v13 }
 0x373   :  { %1547 = vmatprep.mubr.f32.mxu1 %v632_v19  ;;  %1784 = vmatpush3.bf16.msra.mxu0 %v1781_v46 }
 0x374   :  { %1786 = vmatprep.subr.bf16.mxu0 %v1785_v51 }
 0x376   :  { %1548 = vmatmul.mubr.f32.gmra.mrb[12].mxu1 %v633_v20 }
 0x377   :  { %1550 = vmatprep.mubr.f32.mxu1 %v634_v25  ;;  %1788 = vmatpush3.bf16.msra.mxu0 %v1785_v51 }
 0x378   :  { %1790 = vmatprep.subr.bf16.mxu0 %v1789_v35 }
 0x37a   :  { %1551 = vmatmul.mubr.f32.gmra.mrb[14].mxu1 %v635_v27 }
 0x37b   :  { %1792 = vmatpush3.bf16.msra.mxu0 %v1789_v35 }
 0x37c   :  { %1794 = vmatprep.subr.bf16.mxu0 %v1793_v48 }
 0x37f   :  { %1796 = vmatpush3.bf16.msra.mxu0 %v1793_v48 }
 0x380   :  { %1798 = vmatprep.subr.bf16.mxu0 %v1797_v54 }
 0x383   :  { %1800 = vmatpush3.bf16.msra.mxu0 %v1797_v54 }
 0x441   :  { %v1543_v55 = vpop.f32.mrb[8].mxu1 }
 0x442   :  { %v773_v57 = vmul.f32 %v1543_v55, %v1543_v55  ;;  %v719_v59 = vpop.f32.mrb[9].mxu1 }
 0x443   :  { %v758_v60 = vadd.f32 %v1543_v55, %v719_v59  ;;  %v772_v61 = vmul.f32 %v719_v59, %v719_v59 }
 0x445   :  { %v780_v0 = vadd.f32 %v773_v57, %v772_v61  ;;  %v1546_v1 = vpop.f32.mrb[10].mxu1 }
 0x446   :  { %v729_v2 = vpop.f32.mrb[11].mxu1  ;;  %v775_v7 = vmul.f32 %v1546_v1, %v1546_v1 }
 0x447   :  { %v759_v3 = vadd.f32 %v758_v60, %v729_v2  ;;  %v774_v5 = vmul.f32 %v729_v2, %v729_v2 }
 0x449   :  { %v781_v8 = vadd.f32 %v780_v0, %v774_v5  ;;  %v1549_v9 = vpop.f32.mrb[12].mxu1  ;;  %v760_v10 = vadd.f32 %v1546_v1, %v759_v3 }
 0x44a   :  { %v739_v58 = vpop.f32.mrb[13].mxu1  ;;  %v777_v4 = vmul.f32 %v1549_v9, %v1549_v9 }
 0x44b   :  { %v761_v56 = vadd.f32 %v760_v10, %v739_v58  ;;  %v776_v62 = vmul.f32 %v739_v58, %v739_v58  ;;  %v782_v63 = vadd.f32 %v781_v8, %v775_v7 }
 0x44d   :  { %v783_v6 = vadd.f32 %v782_v63, %v776_v62  ;;  %v1552_v11 = vpop.f32.mrb[14].mxu1  ;;  %v762_v12 = vadd.f32 %v1549_v9, %v761_v56  ;;  %v1038_v63 = vld [vmem:[#allocation2 + $0x280] sm:$0xff] }
 0x44e   :  { %v749_v14 = vpop.f32.mrb[15].mxu1  ;;  %v779_v21 = vmul.f32 %v1552_v11, %v1552_v11 }
 0x44f   :  { %v763_v16 = vadd.f32 %v762_v12, %v749_v14  ;;  %v778_v17 = vmul.f32 %v749_v14, %v749_v14  ;;  %v784_v18 = vadd.f32 %v783_v6, %v777_v4  ;;  %v1039_v4 = vld [vmem:[#allocation2 + $0x288] sm:$0xff]  ;;  %v1041_v12 = vld [vmem:[#allocation2 + $0x298] sm:$0xff] }
 0x450   :  { %v1801_v6 = vpack.c.bf16 %v1039_v4, %v1038_v63 }
 0x451   :  { %v764_v22 = vadd.f32 %v1552_v11, %v763_v16  ;;  %v785_v23 = vadd.f32 %v784_v18, %v778_v17  ;;  %v1042_v16 = vld [vmem:[#allocation2 + $0x2a0] sm:$0xff]  ;;  %v1043_v17 = vld [vmem:[#allocation2 + $0x2a8] sm:$0xff] }
 0x452   :  { %1802 = vmatprep.subr.bf16.mxu1 %v1801_v6  ;;  %v1809_v18 = vpack.c.bf16 %v1043_v17, %v1042_v16 }
 0x453   :  { %v765_v24 = vrot.slane %v764_v22, 4  ;;  %v786_v26 = vadd.f32 %v785_v23, %v779_v21  ;;  %1804 = vmatpush3.bf16.msra.mxu1 %v1801_v6  ;;  %v1044_v21 = vld [vmem:[#allocation2 + $0x2b0] sm:$0xff] }
 0x455   :  { %v766_v28 = vadd.f32 %v765_v24, %v764_v22  ;;  %v787_v29 = vrot.slane %v786_v26, 4  ;;  %v1045_v22 = vld [vmem:[#allocation2 + $0x2b8] sm:$0xff]  ;;  %v1046_v24 = vld [vmem:[#allocation2 + $0x2c0] sm:$0xff] }
 0x456   :  { %v1813_v23 = vpack.c.bf16 %v1045_v22, %v1044_v21  ;;  %v997_v21 = vld [vmem:[%s2032_s2 + $0x8] sm:$0x1] }
 0x457   :  { %v767_v15 = vrot.slane %v766_v28, 2  ;;  %v788_v13 = vadd.f32 %v787_v29, %v786_v26  ;;  %v1047_v26 = vld [vmem:[#allocation2 + $0x2c8] sm:$0xff]  ;;  %v1048_v29 = vld [vmem:[#allocation2 + $0x2d0] sm:$0xff] }
 0x459   :  { %v768_v19 = vadd.f32 %v767_v15, %v766_v28  ;;  %v789_v20 = vrot.slane %v788_v13, 2  ;;  %v1817_v28 = vpack.c.bf16 %v1047_v26, %v1046_v24  ;;  %v1049_v15 = vld [vmem:[#allocation2 + $0x2d8] sm:$0xff]  ;;  %v998_v24 = vld [vmem:[%s2032_s2 + $0x9] sm:$0x1] }
 0x45b   :  { %v769_v25 = vrot.slane %v768_v19, 1  ;;  %v790_v27 = vadd.f32 %v789_v20, %v788_v13  ;;  %v1821_v13 = vpack.c.bf16 %v1049_v15, %v1048_v29  ;;  %v1051_v20 = vld [vmem:[#allocation2 + $0x2e8] sm:$0xff] }
 0x45d   :  { %v770_v30 = vadd.f32 %v769_v25, %v768_v19  ;;  %v791_v31 = vrot.slane %v790_v27, 1  ;;  %v1050_v19 = vld [vmem:[#allocation2 + $0x2e0] sm:$0xff] }
 0x45e   :  { %v1825_v25 = vpack.c.bf16 %v1051_v20, %v1050_v19 }
 0x45f   :  { %v771_v32 = vmul.f32 0.015625, %v770_v30  ;;  %v792_v33 = vadd.f32 %v791_v31, %v790_v27  ;;  %v1052_v27 = vld [vmem:[#allocation2 + $0x2f0] sm:$0xff]  ;;  %v1053_v30 = vld [vmem:[#allocation2 + $0x2f8] sm:$0xff] }
 0x460   :  { %v1829_v31 = vpack.c.bf16 %v1053_v30, %v1052_v27 }
 0x461   :  { %v793_v34 = vmul.f32 0.015625, %v792_v33  ;;  %v794_v36 = vmul.f32 %v771_v32, %v771_v32 }
 0x463   :  { %v795_v38 = vsub.f32 %v793_v34, %v794_v36 }
 0x465   :  { %v796_v39 = vmax.f32 %v795_v38, 0.0 }
 0x467   :  { %v799_v40 = vadd.f32 1e-05, %v796_v39 }
 0x469   :  { %1842 = vrsqrt.f32 %v799_v40 }
 0x473   :  { %v1843_v45 = vpop.eup %1842 }
 0x474   :  { %v801_v46 = vmul.f32 %v1843_v45, %v797_v44 }
 0x476   :  { %v802_v49 = vmul.f32 %v801_v46, %v771_v32  ;;  %v807_v51 = vrot.slane %v801_v46, %v1964_v43 }
 0x478   :  { %v803_v52 = vsub.f32 %v798_v47, %v802_v49  ;;  %v814_v37 = vmul.f32 %v807_v51, %v749_v14  ;;  %v808_v35 = vmul.f32 %v807_v51, %v719_v59  ;;  %v809_v41 = vmul.f32 %v1543_v55, %v807_v51 }
 0x479   :  { %v810_v42 = vmul.f32 %v807_v51, %v729_v2  ;;  %v811_v48 = vmul.f32 %v1546_v1, %v807_v51  ;;  %v812_v50 = vmul.f32 %v807_v51, %v739_v58  ;;  %v813_v53 = vmul.f32 %v1549_v9, %v807_v51 }
 0x47a   :  { %v819_v54 = vrot.slane %v803_v52, %v1964_v43  ;;  %v815_v57 = vmul.f32 %v1552_v11, %v807_v51  ;;  %v1040_v11 = vld [vmem:[#allocation2 + $0x290] sm:$0xff] }
 0x47b   :  { %v1805_v14 = vpack.c.bf16 %v1041_v12, %v1040_v11 }
 0x47c   :  { %v820_v60 = vadd.f32 %v819_v54, %v808_v35  ;;  %v821_v61 = vadd.f32 %v819_v54, %v809_v41  ;;  %v822_v0 = vadd.f32 %v819_v54, %v810_v42  ;;  %v823_v3 = vadd.f32 %v819_v54, %v811_v48 }
 0x47d   :  { %v824_v5 = vadd.f32 %v819_v54, %v812_v50  ;;  %v825_v7 = vadd.f32 %v819_v54, %v813_v53  ;;  %v826_v8 = vadd.f32 %v819_v54, %v814_v37  ;;  %v827_v10 = vadd.f32 %v819_v54, %v815_v57  ;;  %1806 = vmatprep.subr.bf16.mxu1 %v1805_v14 }
 0x47e   :  { %v828_v56 = vmax.f32 %v820_v60, 0.0  ;;  %v829_v62 = vmax.f32 %v821_v61, 0.0  ;;  %v830_v59 = vmax.f32 %v822_v0, 0.0  ;;  %v831_v55 = vmax.f32 %v823_v3, 0.0  ;;  %1808 = vmatpush3.bf16.msra.mxu1 %v1805_v14 }
 0x47f   :  { %v832_v1 = vmax.f32 %v824_v5, 0.0  ;;  %v833_v2 = vmax.f32 %v825_v7, 0.0  ;;  %v834_v9 = vmax.f32 %v826_v8, 0.0  ;;  %v835_v58 = vmax.f32 %v827_v10, 0.0  ;;  %1810 = vmatprep.subr.bf16.mxu1 %v1809_v18 }
 0x480   :  { %1585 = vmatprep.mubr.f32.mxu0 %v828_v56 }
 0x481   :  { %1586 = vmatmul.mubr.f32.vlgmr.msra.gmra.mrb[16].mxu0 %v829_v62 }
 0x482   :  { %1588 = vmatprep.mubr.f32.mxu0 %v830_v59  ;;  %1812 = vmatpush3.bf16.msra.mxu1 %v1809_v18 }
 0x483   :  { %1814 = vmatprep.subr.bf16.mxu1 %v1813_v23 }
 0x485   :  { %1589 = vmatmul.mubr.f32.gmra.mrb[18].mxu0 %v831_v55 }
 0x486   :  { %1591 = vmatprep.mubr.f32.mxu0 %v832_v1  ;;  %1816 = vmatpush3.bf16.msra.mxu1 %v1813_v23 }
 0x487   :  { %1818 = vmatprep.subr.bf16.mxu1 %v1817_v28 }
 0x489   :  { %1592 = vmatmul.mubr.f32.gmra.mrb[20].mxu0 %v833_v2 }
 0x48a   :  { %1594 = vmatprep.mubr.f32.mxu0 %v834_v9  ;;  %1820 = vmatpush3.bf16.msra.mxu1 %v1817_v28 }
 0x48b   :  { %1822 = vmatprep.subr.bf16.mxu1 %v1821_v13 }
 0x48d   :  { %1595 = vmatmul.mubr.f32.gmra.mrb[22].mxu0 %v835_v58 }
 0x48e   :  { %1824 = vmatpush3.bf16.msra.mxu1 %v1821_v13 }
 0x48f   :  { %1826 = vmatprep.subr.bf16.mxu1 %v1825_v25 }
 0x492   :  { %1828 = vmatpush3.bf16.msra.mxu1 %v1825_v25 }
 0x493   :  { %1830 = vmatprep.subr.bf16.mxu1 %v1829_v31 }
 0x496   :  { %1832 = vmatpush3.bf16.msra.mxu1 %v1829_v31 }
 0x554   :  { %v1587_v32 = vpop.f32.mrb[16].mxu0 }
 0x555   :  { %v973_v33 = vmul.f32 %v1587_v32, %v1587_v32  ;;  %v919_v34 = vpop.f32.mrb[17].mxu0 }
 0x556   :  { %v958_v36 = vadd.f32 %v1587_v32, %v919_v34  ;;  %v972_v38 = vmul.f32 %v919_v34, %v919_v34 }
 0x558   :  { %v980_v39 = vadd.f32 %v973_v33, %v972_v38  ;;  %v1590_v40 = vpop.f32.mrb[18].mxu0 }
 0x559   :  { %v929_v44 = vpop.f32.mrb[19].mxu0  ;;  %v975_v47 = vmul.f32 %v1590_v40, %v1590_v40 }
 0x55a   :  { %v959_v45 = vadd.f32 %v958_v36, %v929_v44  ;;  %v974_v46 = vmul.f32 %v929_v44, %v929_v44 }
 0x55c   :  { %v981_v49 = vadd.f32 %v980_v39, %v974_v46  ;;  %v1593_v51 = vpop.f32.mrb[20].mxu0  ;;  %v960_v52 = vadd.f32 %v1590_v40, %v959_v45 }
 0x55d   :  { %v939_v37 = vpop.f32.mrb[21].mxu0  ;;  %v977_v48 = vmul.f32 %v1593_v51, %v1593_v51 }
 0x55e   :  { %v961_v35 = vadd.f32 %v960_v52, %v939_v37  ;;  %v976_v41 = vmul.f32 %v939_v37, %v939_v37  ;;  %v982_v42 = vadd.f32 %v981_v49, %v975_v47 }
 0x560   :  { %v983_v50 = vadd.f32 %v982_v42, %v976_v41  ;;  %v1596_v53 = vpop.f32.mrb[22].mxu0  ;;  %v962_v54 = vadd.f32 %v1593_v51, %v961_v35 }
 0x561   :  { %v949_v57 = vpop.f32.mrb[23].mxu0  ;;  %v979_v3 = vmul.f32 %v1596_v53, %v1596_v53 }
 0x562   :  { %v963_v60 = vadd.f32 %v962_v54, %v949_v57  ;;  %v978_v61 = vmul.f32 %v949_v57, %v949_v57  ;;  %v984_v0 = vadd.f32 %v983_v50, %v977_v48 }
 0x564   :  { %v964_v5 = vadd.f32 %v1596_v53, %v963_v60  ;;  %v985_v7 = vadd.f32 %v984_v0, %v978_v61 }
 0x566   :  { %v965_v8 = vrot.slane %v964_v5, 4  ;;  %v986_v10 = vadd.f32 %v985_v7, %v979_v3 }
 0x568   :  { %v966_v56 = vadd.f32 %v965_v8, %v964_v5  ;;  %v987_v62 = vrot.slane %v986_v10, 4 }
 0x56a   :  { %v967_v59 = vrot.slane %v966_v56, 2  ;;  %v988_v55 = vadd.f32 %v987_v62, %v986_v10 }
 0x56c   :  { %v968_v1 = vadd.f32 %v967_v59, %v966_v56  ;;  %v989_v2 = vrot.slane %v988_v55, 2 }
 0x56e   :  { %v969_v9 = vrot.slane %v968_v1, 1  ;;  %v990_v58 = vadd.f32 %v989_v2, %v988_v55 }
 0x570   :  { %v970_v63 = vadd.f32 %v969_v9, %v968_v1  ;;  %v991_v4 = vrot.slane %v990_v58, 1 }
 0x572   :  { %v971_v6 = vmul.f32 0.015625, %v970_v63  ;;  %v992_v11 = vadd.f32 %v991_v4, %v990_v58 }
 0x574   :  { %v993_v12 = vmul.f32 0.015625, %v992_v11  ;;  %v994_v14 = vmul.f32 %v971_v6, %v971_v6 }
 0x576   :  { %v995_v16 = vsub.f32 %v993_v12, %v994_v14 }
 0x578   :  { %v996_v17 = vmax.f32 %v995_v16, 0.0 }
 0x57a   :  { %v999_v18 = vadd.f32 1e-05, %v996_v17 }
 0x57c   :  { %1844 = vrsqrt.f32 %v999_v18 }
 0x586   :  { %v1845_v22 = vpop.eup %1844 }
 0x587   :  { %v1001_v23 = vmul.f32 %v1845_v22, %v997_v21 }
 0x589   :  { %v1002_v26 = vmul.f32 %v1001_v23, %v971_v6  ;;  %v1007_v28 = vrot.slane %v1001_v23, %v1964_v43 }
 0x58b   :  { %v1003_v29 = vsub.f32 %v998_v24, %v1002_v26  ;;  %v1014_v15 = vmul.f32 %v1007_v28, %v949_v57  ;;  %v1008_v13 = vmul.f32 %v1007_v28, %v919_v34  ;;  %v1009_v19 = vmul.f32 %v1587_v32, %v1007_v28 }
 0x58c   :  { %v1010_v20 = vmul.f32 %v1007_v28, %v929_v44  ;;  %v1011_v25 = vmul.f32 %v1590_v40, %v1007_v28  ;;  %v1012_v27 = vmul.f32 %v1007_v28, %v939_v37  ;;  %v1013_v30 = vmul.f32 %v1593_v51, %v1007_v28  ;;  %v1224_v37 = vld [vmem:[%s2032_s2 + $0xa] ss:$0 sm:$0xff] }
 0x58d   :  { %v1019_v31 = vrot.slane %v1003_v29, %v1964_v43  ;;  %v1015_v33 = vmul.f32 %v1596_v53, %v1007_v28 }
 0x58f   :  { %v1026_v36 = vadd.f32 %v1019_v31, %v1014_v15  ;;  %v1020_v38 = vadd.f32 %v1019_v31, %v1008_v13  ;;  %v1021_v39 = vadd.f32 %v1019_v31, %v1009_v19  ;;  %v1022_v45 = vadd.f32 %v1019_v31, %v1010_v20 }
 0x590   :  { %v1023_v46 = vadd.f32 %v1019_v31, %v1011_v25  ;;  %v1024_v47 = vadd.f32 %v1019_v31, %v1012_v27  ;;  %v1025_v49 = vadd.f32 %v1019_v31, %v1013_v30  ;;  %v1027_v52 = vadd.f32 %v1019_v31, %v1015_v33 }
 0x591   :  { %v1028_v35 = vmax.f32 %v1020_v38, 0.0  ;;  %v1029_v41 = vmax.f32 %v1021_v39, 0.0  ;;  %v1030_v34 = vmax.f32 %v1022_v45, 0.0  ;;  %v1034_v44 = vmax.f32 %v1026_v36, 0.0 }
 0x592   :  { %v1031_v32 = vmax.f32 %v1023_v46, 0.0  ;;  %v1032_v40 = vmax.f32 %v1024_v47, 0.0  ;;  %v1033_v43 = vmax.f32 %v1025_v49, 0.0  ;;  %v1035_v51 = vmax.f32 %v1027_v52, 0.0 }
 0x593   :  { %1629 = vmatprep.mubr.f32.mxu1 %v1028_v35 }
 0x594   :  { %1630 = vmatmul.mubr.f32.vlgmr.msra.gmra.mrb[16].mxu1 %v1029_v41 }
 0x595   :  { %1632 = vmatprep.mubr.f32.mxu1 %v1030_v34 }
 0x598   :  { %1633 = vmatmul.mubr.f32.gmra.mrb[18].mxu1 %v1031_v32 }
 0x599   :  { %1635 = vmatprep.mubr.f32.mxu1 %v1032_v40 }
 0x59c   :  { %1636 = vmatmul.mubr.f32.gmra.mrb[20].mxu1 %v1033_v43 }
 0x59d   :  { %1638 = vmatprep.mubr.f32.mxu1 %v1034_v44 }
 0x5a0   :  { %1639 = vmatmul.mubr.f32.gmra.mrb[22].mxu1 %v1035_v51 }
 0x667   :  { %v1631_v42 = vpop.f32.mrb[16].mxu1 }
 0x668   :  { %v1130_v48 = vadd.f32 %v1631_v42, %v1224_v37  ;;  %v1124_v50 = vpop.f32.mrb[17].mxu1 }
 0x669   :  { %v1125_v53 = vadd.f32 %v1224_v37, %v1124_v50 }
 0x66a   :  { %v1226_v54 = vmul.f32 -1.442695, %v1130_v48 }
 0x66b   :  { %v1225_v57 = vmul.f32 -1.442695, %v1125_v53  ;;  %v1634_v60 = vpop.f32.mrb[18].mxu1 }
 0x66c   :  { %1846 = vpow2.f32 %v1226_v54  ;;  %v1140_v61 = vadd.f32 %v1634_v60, %v1224_v37  ;;  %v1134_v0 = vpop.f32.mrb[19].mxu1 }
 0x66d   :  { %1848 = vpow2.f32 %v1225_v57  ;;  %v1135_v3 = vadd.f32 %v1224_v37, %v1134_v0 }
 0x66e   :  { %v1228_v5 = vmul.f32 -1.442695, %v1140_v61 }
 0x66f   :  { %v1227_v7 = vmul.f32 -1.442695, %v1135_v3  ;;  %v1637_v8 = vpop.f32.mrb[20].mxu1 }
 0x670   :  { %1850 = vpow2.f32 %v1228_v5  ;;  %v1150_v10 = vadd.f32 %v1637_v8, %v1224_v37  ;;  %v1144_v56 = vpop.f32.mrb[21].mxu1 }
 0x671   :  { %1852 = vpow2.f32 %v1227_v7  ;;  %v1145_v62 = vadd.f32 %v1224_v37, %v1144_v56 }
 0x672   :  { %v1230_v59 = vmul.f32 -1.442695, %v1150_v10 }
 0x673   :  { %v1229_v55 = vmul.f32 -1.442695, %v1145_v62  ;;  %v1640_v1 = vpop.f32.mrb[22].mxu1 }
 0x674   :  { %1854 = vpow2.f32 %v1230_v59  ;;  %v1160_v2 = vadd.f32 %v1640_v1, %v1224_v37  ;;  %v1154_v9 = vpop.f32.mrb[23].mxu1 }
 0x675   :  { %1856 = vpow2.f32 %v1229_v55  ;;  %v1155_v58 = vadd.f32 %v1224_v37, %v1154_v9 }
 0x676   :  { %v1847_v63 = vpop.eup %1846  ;;  %v1232_v4 = vmul.f32 -1.442695, %v1160_v2 }
 0x677   :  { %v1849_v6 = vpop.eup %1848  ;;  %v1188_v11 = vadd.f32 1.0, %v1847_v63  ;;  %v1231_v12 = vmul.f32 -1.442695, %v1155_v58 }
 0x678   :  { %v1187_v14 = vadd.f32 1.0, %v1849_v6  ;;  %1858 = vpow2.f32 %v1232_v4 }
 0x679   :  { %1860 = vrcp.f32 %v1188_v11 }
 0x67a   :  { %v1851_v16 = vpop.eup %1850  ;;  %1862 = vrcp.f32 %v1187_v14 }
 0x67b   :  { %v1853_v17 = vpop.eup %1852  ;;  %v1190_v18 = vadd.f32 1.0, %v1851_v16  ;;  %1864 = vpow2.f32 %v1231_v12 }
 0x67c   :  { %v1189_v21 = vadd.f32 1.0, %v1853_v17 }
 0x67d   :  { %1866 = vrcp.f32 %v1190_v18 }
 0x67e   :  { %v1855_v22 = vpop.eup %1854  ;;  %1868 = vrcp.f32 %v1189_v21 }
 0x67f   :  { %v1857_v23 = vpop.eup %1856  ;;  %v1192_v24 = vadd.f32 1.0, %v1855_v22 }
 0x680   :  { %v1191_v26 = vadd.f32 1.0, %v1857_v23 }
 0x681   :  { %1870 = vrcp.f32 %v1192_v24 }
 0x682   :  { %v1859_v28 = vpop.eup %1858  ;;  %1872 = vrcp.f32 %v1191_v26 }
 0x683   :  { %v1861_v29 = vpop.eup %1860  ;;  %v1194_v15 = vadd.f32 1.0, %v1859_v28 }
 0x684   :  { %v1863_v13 = vpop.eup %1862  ;;  %1212 = vst [vmem:[%s2033_s3 + $0x8] sm:$0xff] %v1861_v29 }
 0x685   :  { %v1865_v19 = vpop.eup %1864  ;;  %1211 = vst [vmem:[%s2033_s3] sm:$0xff] %v1863_v13  ;;  %1874 = vrcp.f32 %v1194_v15 }
 0x686   :  { %v1193_v20 = vadd.f32 1.0, %v1865_v19 }
 0x687   :  { %v1867_v25 = vpop.eup %1866 }
 0x688   :  { %v1869_v27 = vpop.eup %1868  ;;  %1214 = vst [vmem:[%s2033_s3 + $0x18] sm:$0xff] %v1867_v25  ;;  %1876 = vrcp.f32 %v1193_v20 }
 0x689   :  { %1213 = vst [vmem:[%s2033_s3 + $0x10] sm:$0xff] %v1869_v27 }
 0x68b   :  { %v1871_v30 = vpop.eup %1870 }
 0x68c   :  { %v1873_v31 = vpop.eup %1872  ;;  %1216 = vst [vmem:[%s2033_s3 + $0x28] sm:$0xff] %v1871_v30 }
 0x68d   :  { %1215 = vst [vmem:[%s2033_s3 + $0x20] sm:$0xff] %v1873_v31 }
 0x68f   :  { %v1875_v33 = vpop.eup %1874 }
 0x690   :  { %1218 = vst [vmem:[%s2033_s3 + $0x38] sm:$0xff] %v1875_v33 }
 0x692   :  { %v1877_v36 = vpop.eup %1876 }
 0x693   :  { %1217 = vst [vmem:[%s2033_s3 + $0x30] sm:$0xff] %v1877_v36 }
 0x694   :  { %1223 = vsyncpa [#allocation3], 1 }

</bundles_post_ra>
